<compile_context>
chip_gen: v5e
topology: v5e:2x2
jax: 0.10.0
libtpu: 0.0.40
codegen_flags: <defaults>
</compile_context>

<pallas_src>
import functools

import jax
import jax.numpy as jnp
from jax.experimental import pallas as pl
from jax.experimental.pallas import tpu as pltpu


def _round_up(n, m):
    return ((n + m - 1) // m) * m


def _bf16_vpu_native():
    """v6e / v7x have bf16-native VPU/EUP; v5e and earlier do not."""
    try:
        kind = jax.devices()[0].device_kind.lower()
    except Exception:
        return False
    return not any(t in kind for t in ("v2", "v3", "v4", "v5"))


def mlp_kernel(xt_ref, w1t_ref, b1_ref, w2t_ref, b2_ref, w3_ref, b3_ref, o_ref,
               *, act_dtype):
    """Fused 3-layer MLP, feature-major (batch along the 128-lane axis).

    xt_ref : (in_dim, tile_m) bf16     w1t_ref: (64, in_dim) bf16
    w2t_ref: (64, 64)        bf16      w3_ref : (64, 1)      f32
    b1_ref : (64, 1) f32   b2_ref: (64, 1) f32   b3_ref: (1, 1) f32
    o_ref  : (1, tile_m) f32 (lane-dense store)
    """
    xt = xt_ref[...]

    # Layer 1: bf16 MXU matmul, f32 accumulate.  (64, in_dim) @ (in_dim, tile_m)
    h1 = jnp.dot(w1t_ref[...], xt, preferred_element_type=jnp.float32) + b1_ref[...]
    h1 = h1.astype(act_dtype)
    # SiLU with single-EUP sigmoid: sig(x) = 0.5*tanh(0.5*x) + 0.5
    h1 = h1 * (0.5 * jnp.tanh(0.5 * h1) + 0.5)

    # Layer 2: bf16 MXU matmul, f32 accumulate.  (64, 64) @ (64, tile_m)
    h2 = jnp.dot(w2t_ref[...], h1.astype(jnp.bfloat16),
                 preferred_element_type=jnp.float32) + b2_ref[...]
    h2 = h2.astype(act_dtype)
    h2 = h2 * (0.5 * jnp.tanh(0.5 * h2) + 0.5)

    # Layer 3 (64 -> 1): VPU multiply + cross-sublane (XLU) reduce in f32 —
    # avoids an N=1 MXU matmul that would use 1/128 of the columns.
    out = jnp.sum(h2.astype(jnp.float32) * w3_ref[...], axis=0, keepdims=True) + b3_ref[...]
    o_ref[...] = out.astype(o_ref.dtype)


def fnn_model_3_forward(x, params, *, tile_m=4096):
    """x: (batch, input_size) float32. Returns (batch, 1) float32.

    Weights are stored torch-style as (in_features, out_features); the wrapper
    transposes/casts them once so the kernel runs feature-major (W^T @ x^T) in bf16.
    """
    w1, b1, w2, b2, w3, b3 = params
    batch, in_dim = x.shape
    hid = w1.shape[1]
    out_dim = w3.shape[1]

    lane = 128
    padded_lane = _round_up(batch, lane)
    # Tile = min(requested, 128-padded batch), multiple of 128.
    tile_m = max(lane, min(_round_up(tile_m, lane), padded_lane))
    # Ensure >= 2 "parallel" grid steps whenever the batch allows it so both v7x
    # TensorCores get work; costs one extra ~0.35us pipeline step on v5e/v6e.
    if padded_lane >= 2 * lane and padded_lane // tile_m < 2:
        tile_m = _round_up((padded_lane + 1) // 2, lane)
    padded = _round_up(batch, tile_m)

    # Feature-major bf16 input, batch along lanes.  Single fused pad + transpose
    # (no zeros+scatter) so input HBM traffic isn't doubled.
    xt = jnp.pad(x.astype(jnp.bfloat16), ((0, padded - batch), (0, 0))).T

    # bf16 matmul operands (f32 accumulation in-kernel); f32 biases and reduce weights.
    w1t = w1.T.astype(jnp.bfloat16)                    # (hid, in_dim)
    w2t = w2.T.astype(jnp.bfloat16)                    # (hid, hid)
    b1c = b1.reshape(hid, 1).astype(jnp.float32)
    b2c = b2.reshape(hid, 1).astype(jnp.float32)
    w3c = w3.astype(jnp.float32)                       # (hid, 1) final reduce weights
    b3c = b3.reshape(out_dim, 1).astype(jnp.float32)   # (1, 1)

    act_dtype = jnp.bfloat16 if _bf16_vpu_native() else jnp.float32

    grid = (padded // tile_m,)
    full = lambda shape: pl.BlockSpec(shape, lambda i: (0, 0))

    out_t = pl.pallas_call(
        functools.partial(mlp_kernel, act_dtype=act_dtype),
        out_shape=jax.ShapeDtypeStruct((out_dim, padded), jnp.float32),
        grid_spec=pltpu.PrefetchScalarGridSpec(
            num_scalar_prefetch=0,
            grid=grid,
            in_specs=[
                pl.BlockSpec((in_dim, tile_m), lambda i: (0, i)),   # x tile (lane-dense)
                full(w1t.shape),                                    # W1^T (64, in_dim)
                full(b1c.shape),                                    # b1   (64, 1)
                full(w2t.shape),                                    # W2^T (64, 64)
                full(b2c.shape),                                    # b2   (64, 1)
                full(w3c.shape),                                    # W3   (64, 1)
                full(b3c.shape),                                    # b3   (1, 1)
            ],
            out_specs=pl.BlockSpec((out_dim, tile_m), lambda i: (0, i)),
        ),
        compiler_params=pltpu.CompilerParams(
            dimension_semantics=("parallel",),
        ),
    )(xt, w1t, b1c, w2t, b2c, w3c, b3c)

    return out_t[:, :batch].T.astype(x.dtype)       # (batch, 1)


def init_params(key, input_size=5, hidden=64, out=1):
    """Deterministic init mimicking torch.nn.Linear default (U[-1/sqrt(fan_in), 1/sqrt(fan_in)])."""
    ks = jax.random.split(key, 6)

    def lin(kw, kb, fan_in, fan_out):
        bound = 1.0 / jnp.sqrt(fan_in)
        w = jax.random.uniform(kw, (fan_in, fan_out), jnp.float32, -bound, bound)
        b = jax.random.uniform(kb, (fan_out,), jnp.float32, -bound, bound)
        return w, b

    w1, b1 = lin(ks[0], ks[1], input_size, hidden)
    w2, b2 = lin(ks[2], ks[3], hidden, hidden)
    w3, b3 = lin(ks[4], ks[5], hidden, out)
    return (w1, b1, w2, b2, w3, b3)


def reference_forward(x, params):
    w1, b1, w2, b2, w3, b3 = params
    silu = lambda v: v * jax.nn.sigmoid(v)
    h1 = silu(x @ w1 + b1)
    h2 = silu(h1 @ w2 + b2)
    return h2 @ w3 + b3


if __name__ == "__main__":
    key = jax.random.PRNGKey(0)
    kp, kx1, kx2 = jax.random.split(key, 3)

    input_size = 5  # catagory == 'K3'
    params = init_params(kp, input_size=input_size)

    # Small ragged batch (exercises the padding path, grid=(1,)).
    x_small = jax.random.normal(kx1, (16, input_size), jnp.float32)
    out_small = jax.block_until_ready(fnn_model_3_forward(x_small, params))
    ref_small = reference_forward(x_small, params)
    assert out_small.shape == (16, 1), out_small.shape
    # bf16 matmul operands with f32 accumulation: observed error ~1e-3; 1e-2 budget.
    assert jnp.allclose(out_small, ref_small, atol=1e-2, rtol=1e-2), \
        float(jnp.max(jnp.abs(out_small - ref_small)))

    # Batch >= 256 -> >= 2 grid steps (exercises the v7x dual-TensorCore path).
    x_big = jax.random.normal(kx2, (300, input_size), jnp.float32)
    out_big = jax.block_until_ready(fnn_model_3_forward(x_big, params))
    ref_big = reference_forward(x_big, params)
    assert out_big.shape == (300, 1), out_big.shape
    assert jnp.allclose(out_big, ref_big, atol=1e-2, rtol=1e-2), \
        float(jnp.max(jnp.abs(out_big - ref_big)))

    print("KERNEL_OK")
</pallas_src>

<mosaic_0001>
module attributes {stable_mosaic.version = 11 : i64} {
  func.func @mlp_kernel(%arg0: i32, %arg1: memref<5x128xbf16, #tpu.memory_space<vmem>>, %arg2: memref<64x5xbf16, #tpu.memory_space<vmem>>, %arg3: memref<64x1xf32, #tpu.memory_space<vmem>>, %arg4: memref<64x64xbf16, #tpu.memory_space<vmem>>, %arg5: memref<64x1xf32, #tpu.memory_space<vmem>>, %arg6: memref<64x1xf32, #tpu.memory_space<vmem>>, %arg7: memref<1x1xf32, #tpu.memory_space<vmem>>, %arg8: memref<1x128xf32, #tpu.memory_space<vmem>>) attributes {dimension_semantics = [#tpu.dimension_semantics<parallel>], iteration_bounds = array<i64: 1>, scalar_prefetch = 0 : i64, scratch_operands = 0 : i64, tpu.core_type = #tpu.core_type<tc>, window_params = [{transform_indices = @transform_0, window_bounds = array<i64: 5, 128>}, {pipeline_mode = #tpu.pipeline_mode<synchronous>, transform_indices = @transform_1, window_bounds = array<i64: 64, 5>}, {pipeline_mode = #tpu.pipeline_mode<synchronous>, transform_indices = @transform_2, window_bounds = array<i64: 64, 1>}, {pipeline_mode = #tpu.pipeline_mode<synchronous>, transform_indices = @transform_3, window_bounds = array<i64: 64, 64>}, {pipeline_mode = #tpu.pipeline_mode<synchronous>, transform_indices = @transform_4, window_bounds = array<i64: 64, 1>}, {pipeline_mode = #tpu.pipeline_mode<synchronous>, transform_indices = @transform_5, window_bounds = array<i64: 64, 1>}, {pipeline_mode = #tpu.pipeline_mode<synchronous>, transform_indices = @transform_6, window_bounds = array<i64: 1, 1>}, {transform_indices = @transform_7, window_bounds = array<i64: 1, 128>}]} {
    %c0 = arith.constant 0 : index
    %c0_0 = arith.constant 0 : index
    %0 = vector.load %arg1[%c0, %c0_0] : memref<5x128xbf16, #tpu.memory_space<vmem>>, vector<5x128xbf16>
    %c0_1 = arith.constant 0 : index
    %c0_2 = arith.constant 0 : index
    %1 = vector.load %arg2[%c0_1, %c0_2] : memref<64x5xbf16, #tpu.memory_space<vmem>>, vector<64x5xbf16>
    %cst = arith.constant dense<0.000000e+00> : vector<64x128xf32>
    %2 = tpu.matmul %1, %0, %cst {dimension_numbers = #tpu.dot_dimension_numbers<[1], [0], [0], [1], [0, 0, 1, 1], [], []>} : vector<64x5xbf16>, vector<5x128xbf16>, vector<64x128xf32> -> vector<64x128xf32>
    %c0_3 = arith.constant 0 : index
    %c0_4 = arith.constant 0 : index
    %3 = vector.load %arg3[%c0_3, %c0_4] : memref<64x1xf32, #tpu.memory_space<vmem>>, vector<64x1xf32>
    %4 = vector.broadcast %3 : vector<64x1xf32> to vector<64x128xf32>
    %5 = arith.addf %2, %4 : vector<64x128xf32>
    %6 = arith.truncf %5 : vector<64x128xf32> to vector<64x128xbf16>
    %cst_5 = arith.constant 5.000000e-01 : bf16
    %7 = vector.broadcast %cst_5 : bf16 to vector<64x128xbf16>
    %8 = arith.mulf %7, %6 : vector<64x128xbf16>
    %9 = math.tanh %8 : vector<64x128xbf16>
    %cst_6 = arith.constant 5.000000e-01 : bf16
    %10 = vector.broadcast %cst_6 : bf16 to vector<64x128xbf16>
    %11 = arith.mulf %10, %9 : vector<64x128xbf16>
    %cst_7 = arith.constant 5.000000e-01 : bf16
    %12 = vector.broadcast %cst_7 : bf16 to vector<64x128xbf16>
    %13 = arith.addf %11, %12 : vector<64x128xbf16>
    %14 = arith.mulf %6, %13 : vector<64x128xbf16>
    %c0_8 = arith.constant 0 : index
    %c0_9 = arith.constant 0 : index
    %15 = vector.load %arg4[%c0_8, %c0_9] : memref<64x64xbf16, #tpu.memory_space<vmem>>, vector<64x64xbf16>
    %cst_10 = arith.constant dense<0.000000e+00> : vector<64x128xf32>
    %16 = tpu.matmul %15, %14, %cst_10 {dimension_numbers = #tpu.dot_dimension_numbers<[1], [0], [0], [1], [0, 0, 1, 1], [], []>} : vector<64x64xbf16>, vector<64x128xbf16>, vector<64x128xf32> -> vector<64x128xf32>
    %c0_11 = arith.constant 0 : index
    %c0_12 = arith.constant 0 : index
    %17 = vector.load %arg5[%c0_11, %c0_12] : memref<64x1xf32, #tpu.memory_space<vmem>>, vector<64x1xf32>
    %18 = vector.broadcast %17 : vector<64x1xf32> to vector<64x128xf32>
    %19 = arith.addf %16, %18 : vector<64x128xf32>
    %20 = arith.truncf %19 : vector<64x128xf32> to vector<64x128xbf16>
    %cst_13 = arith.constant 5.000000e-01 : bf16
    %21 = vector.broadcast %cst_13 : bf16 to vector<64x128xbf16>
    %22 = arith.mulf %21, %20 : vector<64x128xbf16>
    %23 = math.tanh %22 : vector<64x128xbf16>
    %cst_14 = arith.constant 5.000000e-01 : bf16
    %24 = vector.broadcast %cst_14 : bf16 to vector<64x128xbf16>
    %25 = arith.mulf %24, %23 : vector<64x128xbf16>
    %cst_15 = arith.constant 5.000000e-01 : bf16
    %26 = vector.broadcast %cst_15 : bf16 to vector<64x128xbf16>
    %27 = arith.addf %25, %26 : vector<64x128xbf16>
    %28 = arith.mulf %20, %27 : vector<64x128xbf16>
    %29 = arith.extf %28 : vector<64x128xbf16> to vector<64x128xf32>
    %c0_16 = arith.constant 0 : index
    %c0_17 = arith.constant 0 : index
    %30 = vector.load %arg6[%c0_16, %c0_17] : memref<64x1xf32, #tpu.memory_space<vmem>>, vector<64x1xf32>
    %31 = vector.broadcast %30 : vector<64x1xf32> to vector<64x128xf32>
    %32 = arith.mulf %29, %31 : vector<64x128xf32>
    %cst_18 = arith.constant dense<0.000000e+00> : vector<128xf32>
    %33 = vector.multi_reduction <add>, %32, %cst_18 [0] : vector<64x128xf32> to vector<128xf32>
    %34 = vector.shape_cast %33 : vector<128xf32> to vector<1x128xf32>
    %c0_19 = arith.constant 0 : index
    %c0_20 = arith.constant 0 : index
    %35 = vector.load %arg7[%c0_19, %c0_20] : memref<1x1xf32, #tpu.memory_space<vmem>>, vector<1x1xf32>
    %36 = vector.broadcast %35 : vector<1x1xf32> to vector<1x128xf32>
    %37 = arith.addf %34, %36 : vector<1x128xf32>
    %c0_21 = arith.constant 0 : index
    %c0_22 = arith.constant 0 : index
    %38 = vector.load %arg8[%c0_21, %c0_22] : memref<1x128xf32, #tpu.memory_space<vmem>>, vector<1x128xf32>
    tpu.vector_store %arg8[%c0_21, %c0_22], %37 {strides = array<i32>} : memref<1x128xf32, #tpu.memory_space<vmem>>, vector<1x128xf32>,
    return
  }
  func.func @transform_0(%arg0: i32) -> (i32, i32) {
    %c0_i32 = arith.constant 0 : i32
    %c0_i32_0 = arith.constant 0 : i32
    return %c0_i32, %arg0 : i32, i32
  }
  func.func @transform_1(%arg0: i32) -> (i32, i32) {
    %c0_i32 = arith.constant 0 : i32
    %c0_i32_0 = arith.constant 0 : i32
    %c0_i32_1 = arith.constant 0 : i32
    return %c0_i32, %c0_i32_0 : i32, i32
  }
  func.func @transform_2(%arg0: i32) -> (i32, i32) {
    %c0_i32 = arith.constant 0 : i32
    %c0_i32_0 = arith.constant 0 : i32
    %c0_i32_1 = arith.constant 0 : i32
    return %c0_i32, %c0_i32_0 : i32, i32
  }
  func.func @transform_3(%arg0: i32) -> (i32, i32) {
    %c0_i32 = arith.constant 0 : i32
    %c0_i32_0 = arith.constant 0 : i32
    %c0_i32_1 = arith.constant 0 : i32
    return %c0_i32, %c0_i32_0 : i32, i32
  }
  func.func @transform_4(%arg0: i32) -> (i32, i32) {
    %c0_i32 = arith.constant 0 : i32
    %c0_i32_0 = arith.constant 0 : i32
    %c0_i32_1 = arith.constant 0 : i32
    return %c0_i32, %c0_i32_0 : i32, i32
  }
  func.func @transform_5(%arg0: i32) -> (i32, i32) {
    %c0_i32 = arith.constant 0 : i32
    %c0_i32_0 = arith.constant 0 : i32
    %c0_i32_1 = arith.constant 0 : i32
    return %c0_i32, %c0_i32_0 : i32, i32
  }
  func.func @transform_6(%arg0: i32) -> (i32, i32) {
    %c0_i32 = arith.constant 0 : i32
    %c0_i32_0 = arith.constant 0 : i32
    %c0_i32_1 = arith.constant 0 : i32
    return %c0_i32, %c0_i32_0 : i32, i32
  }
  func.func @transform_7(%arg0: i32) -> (i32, i32) {
    %c0_i32 = arith.constant 0 : i32
    %c0_i32_0 = arith.constant 0 : i32
    return %c0_i32, %arg0 : i32, i32
  }
}

</mosaic_0001>

<bundles_post_ra>
// kernel: tpu_custom_call.1
= control target key start
LH: loop header
LB: loop body
LE: loop exit
PB: predicated region body
PF: predicated region fallthrough
CT: control target
= control target key end

     0   :  { %s961_s0 = inlined_call_operand.vmem [shape: bf16[5,128], index: 0, kind: input, shape index: {}]   ;;  %s962_s1 = inlined_call_operand.vmem [shape: bf16[64,5], index: 1, kind: input, shape index: {}]   ;;  %s963_s2 = inlined_call_operand.vmem [shape: f32[64,1], index: 2, kind: input, shape index: {}]   ;;  %s964_s3 = inlined_call_operand.vmem [shape: bf16[64,64], index: 3, kind: input, shape index: {}]   ;;  %s965_s4 = inlined_call_operand.vmem [shape: f32[64,1], index: 4, kind: input, shape index: {}]   ;;  %s966_s5 = inlined_call_operand.vmem [shape: f32[64,1], index: 5, kind: input, shape index: {}]   ;;  %s967_s6 = inlined_call_operand.<no memory space> [shape: f32[1,1], index: 6, kind: input, shape index: {}]   ;;  %s968_s7 = inlined_call_operand.hbm [shape: f32[1,128], index: 7, kind: output, shape index: {}]  }
   0x1   :  { %v12_v0 = vstv %s967_s6 }
   0x2   :  { %13 = vst [vmem:[#allocation2] sm:$0x1] %v12_v0 }
   0x3   :  { %v45_v1 = vld [vmem:[%s963_s2 + $0x30] sm:$0xff]  ;;  %v43_v2 = vld [vmem:[%s963_s2 + $0x20] sm:$0xff]  ;;  %vm120_vm0 = vcmask 1041408   ;;  %v745_v3 = vmov 0   ;;  %vm121_vm1 = vcmask 1042432   ;;  %v746_v5 = vmov 65535  }
   0x4   :  { %684 = vset.pattern.permute.xlu0 %v745_v3  ;;  %685 = vset.pattern.permute.xlu1 %v745_v3  ;;  %v30_v4 = vld [vmem:[%s961_s0] sm:$0x7]  ;;  %v122_v6 = vsel %vm120_vm0, 4294967295, %v746_v5  ;;  %v41_v9 = vld [vmem:[%s963_s2 + $0x10] sm:$0xff]  ;;  %v669_v10 = vld [vmem:[%s962_s1 + $0x8] sm:$0xff] }
   0x5   :  { %79 = vperm.xlu0 %684, %v45_v1   ;;  %69 = vperm.xlu1 %685, %v43_v2   ;;  %v123_v7 = vsel %vm121_vm1, %v122_v6, 0  ;;  %v668_v11 = vld [vmem:[%s962_s1] sm:$0xff] }
   0x6   :  { %686 = vset.pattern.permute.xlu2 %v745_v3  ;;  %v125_v8 = vand.u32 %v123_v7, %v30_v4 }
   0x7   :  { %59 = vperm.xlu2 %686, %v41_v9  }
   0x8   :  { %14 = vsyncpa [#allocation4], 0  ;;  %676 = vmatpush.bf16.msra.mxu3 %v125_v8  ;;  %134 = vmatpush.bf16.msra.mxu0 %v125_v8  ;;  %vm107_vm2 = vcmask 39936   ;;  %v46_v12 = vld [vmem:[%s963_s2 + $0x38] sm:$0xff]  ;;  %v44_v13 = vld [vmem:[%s963_s2 + $0x28] sm:$0xff]  ;;  %vm356_vm3 = vcmask 523264  }
   0x9   :  { %v42_v14 = vld [vmem:[%s963_s2 + $0x18] sm:$0xff]  ;;  %v39_v15 = vld [vmem:[%s963_s2] sm:$0xff]  ;;  %v40_v16 = vld [vmem:[%s963_s2 + $0x8] sm:$0xff]  ;;  %s619_s15 = sshll.u32 %s968_s7, 4  ;;  %s620_s15 = int_to_ptr.hbm [resolvable:$true] %s619_s15 }
   0xa   :  { %v288_v17 = vld [vmem:[%s965_s4] sm:$0xff]  ;;  %v670_v18 = vld [vmem:[%s962_s1 + $0x10] sm:$0xff]  ;;  %v289_v19 = vld [vmem:[%s965_s4 + $0x8] sm:$0xff] }
   0xb   :  { %645 = vmatmul.msk.bf16.vlgmr.msra.gmra.mxu3 %vm107_vm2, %v669_v10  ;;  %644 = vmatmul.msk.bf16.vlgmr.msra.gmra.mxu0 %vm107_vm2, %v668_v11  ;;  %v290_v20 = vld [vmem:[%s965_s4 + $0x10] sm:$0xff]  ;;  %v291_v21 = vld [vmem:[%s965_s4 + $0x18] sm:$0xff]  ;;  %v292_v22 = vld [vmem:[%s965_s4 + $0x20] sm:$0xff] }
   0xc   :  { %v293_v23 = vld [vmem:[%s965_s4 + $0x28] sm:$0xff]  ;;  %v294_v24 = vld [vmem:[%s965_s4 + $0x30] sm:$0xff]  ;;  %v671_v25 = vld [vmem:[%s962_s1 + $0x18] sm:$0xff] }
   0xd   :  { %84 = vperm.xlu0 %684, %v46_v12   ;;  %74 = vperm.xlu1 %685, %v44_v13   ;;  %v295_v26 = vld [vmem:[%s965_s4 + $0x38] sm:$0xff]  ;;  %v534_v27 = vld [vmem:[%s966_s5] sm:$0xff]  ;;  %v535_v28 = vld [vmem:[%s966_s5 + $0x8] sm:$0xff] }
   0xe   :  { %v536_v29 = vld [vmem:[%s966_s5 + $0x10] sm:$0xff]  ;;  %v537_v30 = vld [vmem:[%s966_s5 + $0x18] sm:$0xff]  ;;  %v538_v31 = vld [vmem:[%s966_s5 + $0x20] sm:$0xff] }
   0xf   :  { %64 = vperm.xlu2 %686, %v42_v14   ;;  %v539_v32 = vld [vmem:[%s966_s5 + $0x28] sm:$0xff]  ;;  %v540_v33 = vld [vmem:[%s966_s5 + $0x30] sm:$0xff]  ;;  %v541_v34 = vld [vmem:[%s966_s5 + $0x38] sm:$0xff] }
  0x10   :  { %v603_v35 = vld [vmem:[#allocation2] sm:$0x1] }
  0x15   :  { %49 = vperm.xlu0 %684, %v39_v15   ;;  %54 = vperm.xlu1 %685, %v40_v16  }
  0x17   :  { %298 = vperm.xlu2 %686, %v288_v17  }
  0x1b   :  { %646 = vmatmul.msk.bf16.gmra.mxu3 %vm107_vm2, %v670_v18 }
  0x1d   :  { %303 = vperm.xlu0 %684, %v289_v19   ;;  %308 = vperm.xlu1 %685, %v290_v20  }
  0x1f   :  { %313 = vperm.xlu2 %686, %v291_v21  }
  0x25   :  { %318 = vperm.xlu0 %684, %v292_v22   ;;  %323 = vperm.xlu1 %685, %v293_v23  }
  0x27   :  { %328 = vperm.xlu2 %686, %v294_v24  }
  0x2b   :  { %647 = vmatmul.msk.bf16.gmra.mxu3 %vm107_vm2, %v671_v25 }
  0x2d   :  { %333 = vperm.xlu0 %684, %v295_v26   ;;  %544 = vperm.xlu1 %685, %v534_v27  }
  0x2f   :  { %549 = vperm.xlu2 %686, %v535_v28  }
  0x35   :  { %554 = vperm.xlu0 %684, %v536_v29   ;;  %559 = vperm.xlu1 %685, %v537_v30  }
  0x37   :  { %564 = vperm.xlu2 %686, %v538_v31  }
  0x3d   :  { %569 = vperm.xlu0 %684, %v539_v32   ;;  %574 = vperm.xlu1 %685, %v540_v33  }
  0x3f   :  { %579 = vperm.xlu2 %686, %v541_v34  }
  0x45   :  { %606 = vperm.xlu0 %684, %v603_v35  }
  0x61   :  { %v60_v39 = vpop.permute.xlu2 %59 }
  0x69   :  { %v65_v44 = vpop.permute.xlu2 %64 }
  0x77   :  { %v80_v36 = vpop.permute.xlu0 %79  ;;  %v70_v37 = vpop.permute.xlu1 %69 }
  0x7f   :  { %v85_v40 = vpop.permute.xlu0 %84  ;;  %v75_v43 = vpop.permute.xlu1 %74 }
  0x87   :  { %v50_v46 = vpop.permute.xlu0 %49  ;;  %v55_v51 = vpop.permute.xlu1 %54 }
  0x88   :  { %v136_v41 = vpop.f32.mrf.mxu0 }
  0x89   :  { %v137_v50 = vadd.f32 %v136_v41, %v50_v46 }
  0x8b   :  { %v156_v56 = vpack.c.bf16 %v137_v50, %v137_v50 }
  0x8d   :  { %v886_v63 = vunpack.c.l.bf16 %v156_v56 }
  0x8e   :  { %v141_v38 = vpop.f32.mrf.mxu3 }
  0x8f   :  { %v142_v52 = vadd.f32 %v141_v38, %v60_v39  ;;  %v172_v6 = vmul.f32 0.5, %v886_v63 }
  0x90   :  { %v138_v47 = vpop.f32.mrf.mxu0 }
  0x91   :  { %v139_v54 = vadd.f32 %v138_v47, %v55_v51  ;;  %v158_v57 = vpack.c.bf16 %v142_v52, %v142_v52  ;;  %v180_v15 = vpack.c.bf16 %v172_v6, %v172_v6 }
  0x93   :  { %v157_v59 = vpack.c.bf16 %v139_v54, %v139_v54  ;;  %v888_v0 = vunpack.c.l.bf16 %v158_v57  ;;  %v188_v23 = vunpack.c.l.bf16 %v180_v15 }
  0x95   :  { %v891_v3 = vunpack.c.l.bf16 %v157_v59  ;;  %v174_v7 = vmul.f32 0.5, %v888_v0 }
  0x96   :  { %v143_v42 = vpop.f32.mrf.mxu3 }
  0x97   :  { %v144_v48 = vadd.f32 %v143_v42, %v65_v44  ;;  %v173_v10 = vmul.f32 0.5, %v891_v3  ;;  %v182_v16 = vpack.c.bf16 %v174_v7, %v174_v7 }
  0x99   :  { %v159_v55 = vpack.c.bf16 %v144_v48, %v144_v48  ;;  %v181_v20 = vpack.c.bf16 %v173_v10, %v173_v10  ;;  %v190_v24 = vunpack.c.l.bf16 %v182_v16 }
  0x9b   :  { %v884_v61 = vunpack.c.l.bf16 %v159_v55  ;;  %v189_v26 = vunpack.c.l.bf16 %v181_v20 }
  0x9d   :  { %v175_v4 = vmul.f32 0.5, %v884_v61 }
  0x9e   :  { %v146_v45 = vpop.f32.mrf.mxu3 }
  0x9f   :  { %v147_v49 = vadd.f32 %v146_v45, %v70_v37  ;;  %v183_v12 = vpack.c.bf16 %v175_v4, %v175_v4 }
  0xa1   :  { %v160_v53 = vpack.c.bf16 %v147_v49, %v147_v49  ;;  %v191_v21 = vunpack.c.l.bf16 %v183_v12 }
  0xa3   :  { %v882_v58 = vunpack.c.l.bf16 %v160_v53 }
  0xa5   :  { %v176_v1 = vmul.f32 0.5, %v882_v58 }
  0xa6   :  { %v148_v60 = vpop.f32.mrf.mxu3 }
  0xa7   :  { %v149_v62 = vadd.f32 %v148_v60, %v75_v43  ;;  %v184_v8 = vpack.c.bf16 %v176_v1, %v176_v1 }
  0xa9   :  { %v161_v2 = vpack.c.bf16 %v149_v62, %v149_v62  ;;  %v192_v17 = vunpack.c.l.bf16 %v184_v8 }
  0xab   :  { %v894_v5 = vunpack.c.l.bf16 %v161_v2 }
  0xad   :  { %v177_v9 = vmul.f32 0.5, %v894_v5 }
  0xae   :  { %v151_v11 = vpop.f32.mrf.mxu3 }
  0xaf   :  { %v185_v13 = vpack.c.bf16 %v177_v9, %v177_v9  ;;  %v152_v14 = vadd.f32 %v151_v11, %v80_v36 }
  0xb1   :  { %v193_v18 = vunpack.c.l.bf16 %v185_v13  ;;  %v162_v19 = vpack.c.bf16 %v152_v14, %v152_v14 }
  0xb3   :  { %687 = vtanh.f32 %v193_v18  ;;  %v900_v22 = vunpack.c.l.bf16 %v162_v19 }
  0xb4   :  { %689 = vtanh.f32 %v192_v17 }
  0xb5   :  { %v178_v25 = vmul.f32 0.5, %v900_v22  ;;  %691 = vtanh.f32 %v191_v21 }
  0xb6   :  { %v153_v27 = vpop.f32.mrf.mxu3  ;;  %693 = vtanh.f32 %v188_v23 }
  0xb7   :  { %v186_v28 = vpack.c.bf16 %v178_v25, %v178_v25  ;;  %v154_v29 = vadd.f32 %v153_v27, %v85_v40  ;;  %695 = vtanh.f32 %v190_v24 }
  0xb8   :  { %697 = vtanh.f32 %v189_v26 }
  0xb9   :  { %v688_v30 = vpop.eup %687  ;;  %v194_v31 = vunpack.c.l.bf16 %v186_v28  ;;  %v163_v32 = vpack.c.bf16 %v154_v29, %v154_v29 }
  0xba   :  { %v690_v33 = vpop.eup %689  ;;  %v209_v35 = vpack.c.bf16 %v688_v30, %v688_v30 }
  0xbb   :  { %699 = vtanh.f32 %v194_v31  ;;  %v903_v34 = vunpack.c.l.bf16 %v163_v32  ;;  %v692_v36 = vpop.eup %691  ;;  %v208_v39 = vpack.c.bf16 %v690_v33, %v690_v33 }
  0xbc   :  { %v694_v38 = vpop.eup %693  ;;  %v207_v40 = vpack.c.bf16 %v692_v36, %v692_v36  ;;  %v217_v44 = vunpack.c.l.bf16 %v209_v35 }
  0xbd   :  { %v179_v37 = vmul.f32 0.5, %v903_v34  ;;  %v696_v41 = vpop.eup %695  ;;  %v216_v48 = vunpack.c.l.bf16 %v208_v39  ;;  %v204_v50 = vpack.c.bf16 %v694_v38, %v694_v38 }
  0xbe   :  { %v698_v43 = vpop.eup %697  ;;  %v206_v47 = vpack.c.bf16 %v696_v41, %v696_v41  ;;  %v215_v52 = vunpack.c.l.bf16 %v207_v40  ;;  %v225_v53 = vmul.f32 0.5, %v217_v44 }
  0xbf   :  { %v187_v42 = vpack.c.bf16 %v179_v37, %v179_v37  ;;  %v205_v51 = vpack.c.bf16 %v698_v43, %v698_v43  ;;  %v224_v56 = vmul.f32 0.5, %v216_v48  ;;  %v212_v59 = vunpack.c.l.bf16 %v204_v50 }
  0xc0   :  { %v214_v55 = vunpack.c.l.bf16 %v206_v47  ;;  %v223_v62 = vmul.f32 0.5, %v215_v52  ;;  %v233_v2 = vpack.c.bf16 %v225_v53, %v225_v53 }
  0xc1   :  { %v700_v45 = vpop.eup %699  ;;  %v195_v46 = vunpack.c.l.bf16 %v187_v42  ;;  %v213_v60 = vunpack.c.l.bf16 %v205_v51  ;;  %v232_v9 = vpack.c.bf16 %v224_v56, %v224_v56  ;;  %v220_v10 = vmul.f32 0.5, %v212_v59 }
  0xc2   :  { %v210_v49 = vpack.c.bf16 %v700_v45, %v700_v45  ;;  %v222_v6 = vmul.f32 0.5, %v214_v55  ;;  %v241_v13 = vunpack.c.l.bf16 %v233_v2  ;;  %v231_v14 = vpack.c.bf16 %v223_v62, %v223_v62 }
  0xc3   :  { %701 = vtanh.f32 %v195_v46  ;;  %v221_v11 = vmul.f32 0.5, %v213_v60  ;;  %v240_v17 = vunpack.c.l.bf16 %v232_v9  ;;  %v228_v19 = vpack.c.bf16 %v220_v10, %v220_v10 }
  0xc4   :  { %v218_v54 = vunpack.c.l.bf16 %v210_v49  ;;  %v230_v18 = vpack.c.bf16 %v222_v6, %v222_v6  ;;  %v249_v21 = vadd.f32 0.5, %v241_v13  ;;  %v239_v23 = vunpack.c.l.bf16 %v231_v14 }
  0xc5   :  { %v229_v24 = vpack.c.bf16 %v221_v11, %v221_v11  ;;  %v248_v27 = vadd.f32 0.5, %v240_v17  ;;  %v236_v29 = vunpack.c.l.bf16 %v228_v19 }
  0xc6   :  { %v226_v57 = vmul.f32 0.5, %v218_v54  ;;  %v238_v28 = vunpack.c.l.bf16 %v230_v18  ;;  %v257_v31 = vpack.c.bf16 %v249_v21, %v249_v21  ;;  %v247_v32 = vadd.f32 0.5, %v239_v23 }
  0xc7   :  { %v237_v33 = vunpack.c.l.bf16 %v229_v24  ;;  %v256_v37 = vpack.c.bf16 %v248_v27, %v248_v27  ;;  %v244_v39 = vadd.f32 0.5, %v236_v29 }
  0xc8   :  { %v234_v1 = vpack.c.bf16 %v226_v57, %v226_v57  ;;  %v246_v38 = vadd.f32 0.5, %v238_v28  ;;  %v265_v42 = vunpack.c.l.bf16 %v257_v31  ;;  %v255_v43 = vpack.c.bf16 %v247_v32, %v247_v32 }
  0xc9   :  { %v702_v4 = vpop.eup %701  ;;  %v245_v40 = vadd.f32 0.5, %v237_v33  ;;  %v264_v46 = vunpack.c.l.bf16 %v256_v37  ;;  %v252_v48 = vpack.c.bf16 %v244_v39, %v244_v39 }
  0xca   :  { %v211_v7 = vpack.c.bf16 %v702_v4, %v702_v4  ;;  %v242_v8 = vunpack.c.l.bf16 %v234_v1  ;;  %v254_v47 = vpack.c.bf16 %v246_v38, %v246_v38  ;;  %v273_v50 = vmul.f32 %v265_v42, %v894_v5  ;;  %v299_v1 = vpop.permute.xlu2 %298 }
  0xcb   :  { %v263_v51 = vunpack.c.l.bf16 %v255_v43  ;;  %v253_v52 = vpack.c.bf16 %v245_v40, %v245_v40  ;;  %v272_v53 = vmul.f32 %v264_v46, %v882_v58  ;;  %v260_v57 = vunpack.c.l.bf16 %v252_v48  ;;  %v672_v58 = vld [vmem:[%s964_s3] sm:$0xff] }
  0xcc   :  { %v219_v12 = vunpack.c.l.bf16 %v211_v7  ;;  %v250_v16 = vadd.f32 0.5, %v242_v8  ;;  %v262_v54 = vunpack.c.l.bf16 %v254_v47  ;;  %v309_v7 = vpop.permute.xlu1 %308 }
  0xcd   :  { %v278_v55 = vpack.c.bf16 %v273_v50, %v272_v53  ;;  %v271_v56 = vmul.f32 %v263_v51, %v884_v61  ;;  %v268_v60 = vmul.f32 %v260_v57, %v886_v63  ;;  %v674_v61 = vld [vmem:[%s964_s3 + $0x10] sm:$0xff]  ;;  %v673_v63 = vld [vmem:[%s964_s3 + $0x8] sm:$0xff] }
  0xce   :  { %v227_v15 = vmul.f32 0.5, %v219_v12  ;;  %v258_v26 = vpack.c.bf16 %v250_v16, %v250_v16 }
  0xd0   :  { %v235_v20 = vpack.c.bf16 %v227_v15, %v227_v15  ;;  %v266_v36 = vunpack.c.l.bf16 %v258_v26 }
  0xd2   :  { %v243_v25 = vunpack.c.l.bf16 %v235_v20  ;;  %v274_v44 = vmul.f32 %v266_v36, %v900_v22  ;;  %v261_v22 = vunpack.c.l.bf16 %v253_v52  ;;  %v314_v20 = vpop.permute.xlu2 %313 }
  0xd4   :  { %v251_v30 = vadd.f32 0.5, %v243_v25  ;;  %v269_v5 = vmul.f32 %v261_v22, %v891_v3  ;;  %v304_v3 = vpop.permute.xlu0 %303  ;;  %v324_v24 = vpop.permute.xlu1 %323 }
  0xd6   :  { %v259_v35 = vpack.c.bf16 %v251_v30, %v251_v30  ;;  %v276_v62 = vpack.c.bf16 %v269_v5, %v268_v60 }
  0xd8   :  { %v267_v41 = vunpack.c.l.bf16 %v259_v35 }
  0xda   :  { %v275_v45 = vmul.f32 %v267_v41, %v903_v34  ;;  %v270_v34 = vmul.f32 %v262_v54, %v888_v0  ;;  %v675_v0 = vld [vmem:[%s964_s3 + $0x18] sm:$0xff]  ;;  %v329_v43 = vpop.permute.xlu2 %328  ;;  %s747_s3 = smov [#allocation3]  }
  0xdb   :  { %s617_s13 = sshll.u32 %s747_s3, 4  ;;  %s618_s13 = int_to_ptr.vmem [resolvable:$true] %s617_s13 }
  0xdc   :  { %v279_v49 = vpack.c.bf16 %v275_v45, %v274_v44  ;;  %v277_v59 = vpack.c.bf16 %v271_v56, %v270_v34  ;;  %v319_v9 = vpop.permute.xlu0 %318 }
  0xde   :  { %373 = vmatpush.bf16.msra.mxu1 %v279_v49  ;;  %677 = vmatpush.bf16.msra.mxu2 %v279_v49 }
  0xe2   :  { %374 = vmatpush.bf16.msra.mxu1 %v278_v55  ;;  %678 = vmatpush.bf16.msra.mxu2 %v278_v55 }
  0xe6   :  { %375 = vmatpush.bf16.msra.mxu1 %v277_v59  ;;  %679 = vmatpush.bf16.msra.mxu2 %v277_v59 }
  0xea   :  { %376 = vmatpush.bf16.msra.mxu1 %v276_v62  ;;  %680 = vmatpush.bf16.msra.mxu2 %v276_v62 }
  0xed   :  { %664 = vmatmul.msk.bf16.vlgmr.msra.gmra.mxu1 %vm356_vm3, %v672_v58  ;;  %666 = vmatmul.msk.bf16.vlgmr.msra.gmra.mxu2 %vm356_vm3, %v674_v61  ;;  %v334_v61 = vpop.permute.xlu0 %333 }
  0xfd   :  { %665 = vmatmul.msk.bf16.gmra.mxu1 %vm356_vm3, %v673_v63  ;;  %667 = vmatmul.msk.bf16.gmra.mxu2 %vm356_vm3, %v675_v0 }
 0x16a   :  { %v378_v2 = vpop.f32.mrf.mxu1 }
 0x16b   :  { %v379_v4 = vadd.f32 %v378_v2, %v299_v1 }
 0x16d   :  { %v398_v6 = vpack.c.bf16 %v379_v4, %v379_v4 }
 0x16f   :  { %v926_v8 = vunpack.c.l.bf16 %v398_v6 }
 0x170   :  { %v388_v10 = vpop.f32.mrf.mxu2 }
 0x171   :  { %v414_v11 = vmul.f32 0.5, %v926_v8  ;;  %v389_v12 = vadd.f32 %v388_v10, %v319_v9 }
 0x172   :  { %v380_v13 = vpop.f32.mrf.mxu1 }
 0x173   :  { %v422_v14 = vpack.c.bf16 %v414_v11, %v414_v11  ;;  %v402_v15 = vpack.c.bf16 %v389_v12, %v389_v12  ;;  %v381_v16 = vadd.f32 %v380_v13, %v304_v3 }
 0x175   :  { %v430_v17 = vunpack.c.l.bf16 %v422_v14  ;;  %v929_v18 = vunpack.c.l.bf16 %v402_v15  ;;  %v399_v19 = vpack.c.bf16 %v381_v16, %v381_v16 }
 0x177   :  { %703 = vtanh.f32 %v430_v17  ;;  %v418_v21 = vmul.f32 0.5, %v929_v18  ;;  %v932_v23 = vunpack.c.l.bf16 %v399_v19 }
 0x178   :  { %v390_v25 = vpop.f32.mrf.mxu2 }
 0x179   :  { %v426_v26 = vpack.c.bf16 %v418_v21, %v418_v21  ;;  %v415_v27 = vmul.f32 0.5, %v932_v23  ;;  %v391_v28 = vadd.f32 %v390_v25, %v324_v24 }
 0x17a   :  { %v383_v29 = vpop.f32.mrf.mxu1 }
 0x17b   :  { %v434_v30 = vunpack.c.l.bf16 %v426_v26  ;;  %v423_v31 = vpack.c.bf16 %v415_v27, %v415_v27  ;;  %v403_v32 = vpack.c.bf16 %v391_v28, %v391_v28  ;;  %v384_v33 = vadd.f32 %v383_v29, %v309_v7 }
 0x17d   :  { %v704_v35 = vpop.eup %703  ;;  %705 = vtanh.f32 %v434_v30  ;;  %v431_v36 = vunpack.c.l.bf16 %v423_v31  ;;  %v935_v37 = vunpack.c.l.bf16 %v403_v32  ;;  %v400_v38 = vpack.c.bf16 %v384_v33, %v384_v33 }
 0x17e   :  { %v446_v39 = vpack.c.bf16 %v704_v35, %v704_v35 }
 0x17f   :  { %707 = vtanh.f32 %v431_v36  ;;  %v419_v41 = vmul.f32 0.5, %v935_v37  ;;  %v938_v42 = vunpack.c.l.bf16 %v400_v38 }
 0x180   :  { %v454_v40 = vunpack.c.l.bf16 %v446_v39  ;;  %v393_v44 = vpop.f32.mrf.mxu2 }
 0x181   :  { %v427_v45 = vpack.c.bf16 %v419_v41, %v419_v41  ;;  %v416_v46 = vmul.f32 0.5, %v938_v42  ;;  %v394_v47 = vadd.f32 %v393_v44, %v329_v43 }
 0x182   :  { %v462_v48 = vmul.f32 0.5, %v454_v40  ;;  %v385_v49 = vpop.f32.mrf.mxu1 }
 0x183   :  { %v706_v50 = vpop.eup %705  ;;  %v435_v51 = vunpack.c.l.bf16 %v427_v45  ;;  %v424_v52 = vpack.c.bf16 %v416_v46, %v416_v46  ;;  %v404_v53 = vpack.c.bf16 %v394_v47, %v394_v47  ;;  %v386_v54 = vadd.f32 %v385_v49, %v314_v20 }
 0x184   :  { %v450_v55 = vpack.c.bf16 %v706_v50, %v706_v50  ;;  %v470_v5 = vpack.c.bf16 %v462_v48, %v462_v48 }
 0x185   :  { %v708_v56 = vpop.eup %707  ;;  %709 = vtanh.f32 %v435_v51  ;;  %v432_v57 = vunpack.c.l.bf16 %v424_v52  ;;  %v941_v22 = vunpack.c.l.bf16 %v404_v53  ;;  %v401_v34 = vpack.c.bf16 %v386_v54, %v386_v54 }
 0x186   :  { %v458_v59 = vunpack.c.l.bf16 %v450_v55  ;;  %v447_v60 = vpack.c.bf16 %v708_v56, %v708_v56  ;;  %v478_v9 = vunpack.c.l.bf16 %v470_v5 }
 0x187   :  { %711 = vtanh.f32 %v432_v57  ;;  %v420_v62 = vmul.f32 0.5, %v941_v22  ;;  %v944_v58 = vunpack.c.l.bf16 %v401_v34 }
 0x188   :  { %v455_v63 = vunpack.c.l.bf16 %v447_v60  ;;  %v395_v0 = vpop.f32.mrf.mxu2  ;;  %v466_v3 = vmul.f32 0.5, %v458_v59  ;;  %v486_v24 = vadd.f32 0.5, %v478_v9  ;;  %v550_v9 = vpop.permute.xlu2 %549 }
 0x189   :  { %v428_v1 = vpack.c.bf16 %v420_v62, %v420_v62  ;;  %v417_v2 = vmul.f32 0.5, %v944_v58  ;;  %v396_v4 = vadd.f32 %v395_v0, %v334_v61  ;;  %v545_v0 = vpop.permute.xlu1 %544 }
 0x18a   :  { %v463_v6 = vmul.f32 0.5, %v455_v63  ;;  %v474_v16 = vpack.c.bf16 %v466_v3, %v466_v3  ;;  %v494_v36 = vpack.c.bf16 %v486_v24, %v486_v24 }
 0x18b   :  { %v710_v7 = vpop.eup %709  ;;  %v436_v10 = vunpack.c.l.bf16 %v428_v1  ;;  %v425_v11 = vpack.c.bf16 %v417_v2, %v417_v2  ;;  %v405_v12 = vpack.c.bf16 %v396_v4, %v396_v4 }
 0x18c   :  { %v471_v13 = vpack.c.bf16 %v463_v6, %v463_v6  ;;  %v451_v14 = vpack.c.bf16 %v710_v7, %v710_v7  ;;  %v482_v29 = vunpack.c.l.bf16 %v474_v16  ;;  %v502_v48 = vunpack.c.l.bf16 %v494_v36 }
 0x18d   :  { %v712_v15 = vpop.eup %711  ;;  %713 = vtanh.f32 %v436_v10  ;;  %v433_v17 = vunpack.c.l.bf16 %v425_v11  ;;  %v947_v19 = vunpack.c.l.bf16 %v405_v12 }
 0x18e   :  { %v479_v20 = vunpack.c.l.bf16 %v471_v13  ;;  %v459_v21 = vunpack.c.l.bf16 %v451_v14  ;;  %v448_v25 = vpack.c.bf16 %v712_v15, %v712_v15  ;;  %v490_v40 = vadd.f32 0.5, %v482_v29 }
 0x18f   :  { %715 = vtanh.f32 %v433_v17  ;;  %v421_v26 = vmul.f32 0.5, %v947_v19  ;;  %v510_v59 = vmul.f32 %v502_v48, %v926_v8 }
 0x190   :  { %v487_v27 = vadd.f32 0.5, %v479_v20  ;;  %v467_v28 = vmul.f32 0.5, %v459_v21  ;;  %v456_v30 = vunpack.c.l.bf16 %v448_v25  ;;  %v498_v53 = vpack.c.bf16 %v490_v40, %v490_v40  ;;  %v565_v40 = vpop.permute.xlu2 %564 }
 0x191   :  { %v429_v31 = vpack.c.bf16 %v421_v26, %v421_v26  ;;  %v518_v10 = vpack.c.bf16 %v510_v59, %v510_v59 }
 0x192   :  { %v495_v32 = vpack.c.bf16 %v487_v27, %v487_v27  ;;  %v475_v33 = vpack.c.bf16 %v467_v28, %v467_v28  ;;  %v464_v38 = vmul.f32 0.5, %v456_v30  ;;  %v506_v3 = vunpack.c.l.bf16 %v498_v53  ;;  %v555_v30 = vpop.permute.xlu0 %554 }
 0x193   :  { %v714_v35 = vpop.eup %713  ;;  %v437_v39 = vunpack.c.l.bf16 %v429_v31  ;;  %v526_v24 = vunpack.c.l.bf16 %v518_v10 }
 0x194   :  { %v483_v41 = vunpack.c.l.bf16 %v475_v33  ;;  %v472_v44 = vpack.c.bf16 %v464_v38, %v464_v38  ;;  %v452_v45 = vpack.c.bf16 %v714_v35, %v714_v35  ;;  %v503_v46 = vunpack.c.l.bf16 %v495_v32  ;;  %v560_v35 = vpop.permute.xlu1 %559 }
 0x195   :  { %v716_v43 = vpop.eup %715  ;;  %717 = vtanh.f32 %v437_v39  ;;  %v514_v14 = vmul.f32 %v506_v3, %v929_v18  ;;  %v582_v36 = vmul.f32 %v545_v0, %v526_v24 }
 0x196   :  { %v449_v47 = vpack.c.bf16 %v716_v43, %v716_v43  ;;  %v480_v49 = vunpack.c.l.bf16 %v472_v44  ;;  %v460_v50 = vunpack.c.l.bf16 %v452_v45  ;;  %v491_v51 = vadd.f32 0.5, %v483_v41 }
 0x197   :  { %v511_v56 = vmul.f32 %v503_v46, %v932_v23 }
 0x198   :  { %v457_v52 = vunpack.c.l.bf16 %v449_v47  ;;  %v488_v54 = vadd.f32 0.5, %v480_v49  ;;  %v468_v55 = vmul.f32 0.5, %v460_v50  ;;  %v499_v62 = vpack.c.bf16 %v491_v51, %v491_v51 }
 0x199   :  { %v519_v4 = vpack.c.bf16 %v511_v56, %v511_v56 }
 0x19a   :  { %v465_v57 = vmul.f32 0.5, %v457_v52  ;;  %v496_v60 = vpack.c.bf16 %v488_v54, %v488_v54  ;;  %v476_v5 = vpack.c.bf16 %v468_v55, %v468_v55  ;;  %v507_v12 = vunpack.c.l.bf16 %v499_v62  ;;  %v570_v54 = vpop.permute.xlu0 %569 }
 0x19b   :  { %v718_v34 = vpop.eup %717  ;;  %v527_v17 = vunpack.c.l.bf16 %v519_v4 }
 0x19c   :  { %v473_v61 = vpack.c.bf16 %v465_v57, %v465_v57  ;;  %v453_v63 = vpack.c.bf16 %v718_v34, %v718_v34  ;;  %v504_v1 = vunpack.c.l.bf16 %v496_v60  ;;  %v484_v2 = vunpack.c.l.bf16 %v476_v5  ;;  %v575_v34 = vpop.permute.xlu1 %574  ;;  %v580_v5 = vpop.permute.xlu2 %579 }
 0x19d   :  { %v515_v26 = vmul.f32 %v507_v12, %v935_v37  ;;  %v583_v31 = vmul.f32 %v550_v9, %v527_v17 }
 0x19e   :  { %v481_v6 = vunpack.c.l.bf16 %v473_v61  ;;  %v461_v7 = vunpack.c.l.bf16 %v453_v63  ;;  %v512_v23 = vmul.f32 %v504_v1, %v938_v42  ;;  %v492_v11 = vadd.f32 0.5, %v484_v2 }
 0x19f   :  { %v522_v42 = vpack.c.bf16 %v514_v14, %v514_v14  ;;  %v523_v38 = vpack.c.bf16 %v515_v26, %v515_v26  ;;  %v590_v37 = vadd.f32 %v583_v31, %v582_v36 }
 0x1a0   :  { %v489_v13 = vadd.f32 0.5, %v481_v6  ;;  %v469_v8 = vmul.f32 0.5, %v461_v7  ;;  %v520_v15 = vpack.c.bf16 %v512_v23, %v512_v23  ;;  %v500_v16 = vpack.c.bf16 %v492_v11, %v492_v11 }
 0x1a1   :  { %v530_v44 = vunpack.c.l.bf16 %v522_v42  ;;  %v531_v48 = vunpack.c.l.bf16 %v523_v38 }
 0x1a2   :  { %v497_v20 = vpack.c.bf16 %v489_v13, %v489_v13  ;;  %v477_v21 = vpack.c.bf16 %v469_v8, %v469_v8  ;;  %v508_v25 = vunpack.c.l.bf16 %v500_v16  ;;  %v528_v27 = vunpack.c.l.bf16 %v520_v15 }
 0x1a3   :  { %v586_v51 = vmul.f32 %v565_v40, %v530_v44  ;;  %v587_v55 = vmul.f32 %v570_v54, %v531_v48 }
 0x1a4   :  { %v505_v28 = vunpack.c.l.bf16 %v497_v20  ;;  %v485_v29 = vunpack.c.l.bf16 %v477_v21  ;;  %v516_v32 = vmul.f32 %v508_v25, %v941_v22  ;;  %v584_v39 = vmul.f32 %v555_v30, %v528_v27 }
 0x1a6   :  { %v513_v33 = vmul.f32 %v505_v28, %v944_v58  ;;  %v493_v18 = vadd.f32 0.5, %v485_v29  ;;  %v524_v45 = vpack.c.bf16 %v516_v32, %v516_v32  ;;  %v591_v49 = vadd.f32 %v590_v37, %v584_v39 }
 0x1a8   :  { %v521_v41 = vpack.c.bf16 %v513_v33, %v513_v33  ;;  %v501_v43 = vpack.c.bf16 %v493_v18, %v493_v18  ;;  %v532_v58 = vunpack.c.l.bf16 %v524_v45 }
 0x1aa   :  { %v529_v46 = vunpack.c.l.bf16 %v521_v41  ;;  %v509_v47 = vunpack.c.l.bf16 %v501_v43  ;;  %v588_v59 = vmul.f32 %v575_v34, %v532_v58 }
 0x1ac   :  { %v585_v50 = vmul.f32 %v560_v35, %v529_v46  ;;  %v517_v22 = vmul.f32 %v509_v47, %v947_v19  ;;  %v607_v19 = vpop.permute.xlu0 %606 }
 0x1ad   :  { %v609_v6 = vperm.slane %v607_v19, 0 }
 0x1ae   :  { %v592_v52 = vadd.f32 %v591_v49, %v585_v50  ;;  %v525_v53 = vpack.c.bf16 %v517_v22, %v517_v22 }
 0x1b0   :  { %v593_v56 = vadd.f32 %v592_v52, %v586_v51  ;;  %v533_v57 = vunpack.c.l.bf16 %v525_v53 }
 0x1b2   :  { %v594_v60 = vadd.f32 %v593_v56, %v587_v55  ;;  %v589_v62 = vmul.f32 %v580_v5, %v533_v57 }
 0x1b4   :  { %v595_v61 = vadd.f32 %v594_v60, %v588_v59 }
 0x1b6   :  { %v596_v63 = vadd.f32 %v595_v61, %v589_v62 }
 0x1b8   :  { %v597_v0 = vrot.slane %v596_v63, 4 }
 0x1ba   :  { %v598_v3 = vadd.f32 %v597_v0, %v596_v63 }
 0x1bc   :  { %v599_v1 = vrot.slane %v598_v3, 2 }
 0x1be   :  { %v600_v2 = vadd.f32 %v599_v1, %v598_v3 }
 0x1c0   :  { %v601_v4 = vrot.slane %v600_v2, 1 }
 0x1c2   :  { %v602_v7 = vadd.f32 %v601_v4, %v600_v2 }
 0x1c4   :  { %v610_v9 = vadd.f32 %v609_v6, %v602_v7 }
 0x1c6   :  { %611 = vst [vmem:[#allocation3] sm:$0x1] %v610_v9 }
 0x1c7   :  { %622 = dma.vmem_to_hbm [thread:$0]  %s618_s13, 16, %s620_s15, [#allocation4]  }
 0x1c8   :  { %743 = dma.done.wait [#allocation4], 16  }
 0x1c9   :  { %744 = vsyncadd [#allocation4], 4294967280 }
 0x1ca   :  { %627 = vsyncpa [#allocation4], 1 }

</bundles_post_ra>
